<compile_context>
chip_gen: v6e
topology: v6e:2x2x1
jax: 0.10.0
libtpu: 0.0.40
codegen_flags: <defaults>
</compile_context>

<pallas_src>
import functools

import jax
import jax.numpy as jnp
from jax.experimental import pallas as pl
from jax.experimental.pallas import tpu as pltpu


_VMEM_LIMIT = 48 * 1024 * 1024   # safe on v5e/v6e (128 MiB phys) and v7x (64 MiB phys)


def _round_up(x, m):
    return (x + m - 1) // m * m


# ----------------------------------------------------------------------------
# Pallas kernels
# ----------------------------------------------------------------------------
def matmul_bn_act_kernel(*refs, relu, has_residual):
    """o = act((a @ b) * scale + bias [+ residual]); bf16 MXU, f32 accumulate."""
    if has_residual:
        a_ref, b_ref, sb_ref, r_ref, o_ref, acc_ref = refs
    else:
        a_ref, b_ref, sb_ref, o_ref, acc_ref = refs
        r_ref = None

    @pl.when(pl.program_id(2) == 0)
    def _():
        acc_ref[...] = jnp.zeros_like(acc_ref)

    acc_ref[...] += jnp.dot(a_ref[...], b_ref[...],
                            preferred_element_type=jnp.float32)

    @pl.when(pl.program_id(2) == pl.num_programs(2) - 1)
    def _():
        sb = sb_ref[...]                         # (2, tn) f32: row0 scale, row1 bias
        y = acc_ref[...] * sb[0] + sb[1]
        if has_residual:
            y = y + r_ref[...].astype(jnp.float32)
        if relu:
            y = jnp.maximum(y, 0.0)
        o_ref[...] = y.astype(o_ref.dtype)


def max9_kernel(*refs):
    """Running elementwise max over the 9 taps of a 3x3 window (lane-dense tiles)."""
    srcs, o_ref = refs[:-1], refs[-1]
    m = srcs[0][...]
    for r in srcs[1:]:
        m = jnp.maximum(m, r[...])
    o_ref[...] = m


def avgpool_kernel(x_ref, o_ref):
    # x_ref: [N, H*W, tc] -> mean over spatial axis (f32 accumulation).
    o_ref[...] = jnp.mean(x_ref[...].astype(jnp.float32), axis=1)


# ----------------------------------------------------------------------------
# GEMM wrapper (conv + folded BN + optional residual + optional ReLU)
# ----------------------------------------------------------------------------
def _pick_tiles(M, K, N):
    tm = min(512, _round_up(M, 128))
    tn = min(512, _round_up(N, 128))
    Kp = _round_up(K, 128)
    if Kp <= 2304:                # small/odd K -> single full-K block (no k sweep)
        tk = Kp
    else:
        Kp = _round_up(K, 512)
        tk = 512
    Mp = _round_up(M, tm)
    Np = _round_up(N, tn)
    return tm, tn, tk, Mp, Np, Kp


def matmul_bn_act(a, b, scale, bias, residual=None, relu=True,
                  out_dtype=jnp.bfloat16):
    M, K = a.shape
    Kb, Nc = b.shape
    assert K == Kb
    tm, tn, tk, Mp, Np, Kp = _pick_tiles(M, K, Nc)

    a = jnp.pad(a.astype(jnp.bfloat16), ((0, Mp - M), (0, Kp - K)))
    b = jnp.pad(b.astype(jnp.bfloat16), ((0, Kp - K), (0, Np - Nc)))
    sb = jnp.stack([scale, bias]).astype(jnp.float32)          # (2, Nc)
    sb = jnp.pad(sb, ((0, 0), (0, Np - Nc)))

    in_arrays = [a, b, sb]
    in_specs = [
        pl.BlockSpec((tm, tk), lambda i, j, k: (i, k)),
        pl.BlockSpec((tk, tn), lambda i, j, k: (k, j)),
        pl.BlockSpec((2, tn), lambda i, j, k: (0, j)),
    ]
    has_residual = residual is not None
    if has_residual:
        r = jnp.pad(residual.astype(jnp.bfloat16),
                    ((0, Mp - M), (0, Np - Nc)))
        in_arrays.append(r)
        in_specs.append(pl.BlockSpec((tm, tn), lambda i, j, k: (i, j)))

    out = pl.pallas_call(
        functools.partial(matmul_bn_act_kernel, relu=relu,
                          has_residual=has_residual),
        out_shape=jax.ShapeDtypeStruct((Mp, Np), out_dtype),
        grid_spec=pltpu.PrefetchScalarGridSpec(
            num_scalar_prefetch=0,
            grid=(Mp // tm, Np // tn, Kp // tk),
            in_specs=in_specs,
            out_specs=pl.BlockSpec((tm, tn), lambda i, j, k: (i, j)),
            scratch_shapes=[pltpu.VMEM((tm, tn), jnp.float32)],
        ),
        compiler_params=pltpu.CompilerParams(
            dimension_semantics=("parallel", "parallel", "arbitrary"),
            vmem_limit_bytes=_VMEM_LIMIT),
    )(*in_arrays)
    return out[:M, :Nc]


def _im2col(x, kh, kw, stride, pad):
    """x: NHWC (bf16) -> patches [N*Ho*Wo, kh*kw*C] (XLA layout glue)."""
    # TODO(synk): gather the kh*kw input rows inside the GEMM kernel (manual DMA /
    # data-dependent index_map) instead of materializing the K-inflated patch matrix.
    N, H, W, C = x.shape
    xp = jnp.pad(x, ((0, 0), (pad, pad), (pad, pad), (0, 0)))
    Ho = (H + 2 * pad - kh) // stride + 1
    Wo = (W + 2 * pad - kw) // stride + 1
    cols = []
    for i in range(kh):
        for j in range(kw):
            cols.append(xp[:, i:i + (Ho - 1) * stride + 1:stride,
                           j:j + (Wo - 1) * stride + 1:stride, :])
    patches = jnp.concatenate(cols, axis=-1)           # [N, Ho, Wo, kh*kw*C]
    return patches.reshape(N * Ho * Wo, kh * kw * C), Ho, Wo


def conv_bn_act(x, w, scale, bias, stride=1, pad=0, relu=True, residual=None):
    """x: NHWC bf16, w: [kh, kw, Cin, Cout] bf16. Conv + folded BN (+residual) + ReLU."""
    kh, kw, cin, cout = w.shape
    N = x.shape[0]
    if kh == 1 and kw == 1 and pad == 0:
        if stride > 1:
            x = x[:, ::stride, ::stride, :]
        _, Ho, Wo, C = x.shape
        a = x.reshape(N * Ho * Wo, C)
    else:
        a, Ho, Wo = _im2col(x, kh, kw, stride, pad)
    b = w.reshape(kh * kw * cin, cout)
    if residual is not None:
        residual = residual.reshape(N * Ho * Wo, cout)
    out = matmul_bn_act(a, b, scale, bias, residual=residual, relu=relu)
    return out.reshape(N, Ho, Wo, cout)


# ----------------------------------------------------------------------------
# MaxPool 3x3 / stride 2 and global average pool
# ----------------------------------------------------------------------------
def maxpool_3x3_s2(x):
    N, H, W, C = x.shape
    k, stride, pad = 3, 2, 1
    neg = jnp.asarray(-jnp.inf, x.dtype)
    xp = jnp.pad(x, ((0, 0), (pad, pad), (pad, pad), (0, 0)), constant_values=neg)
    Ho = (H + 2 * pad - k) // stride + 1
    Wo = (W + 2 * pad - k) // stride + 1

    L = N * Ho * Wo * C
    rows = pl.cdiv(L, 128)
    tr = min(1024, _round_up(rows, 8))
    rows_p = _round_up(rows, tr)
    Lp = rows_p * 128

    slices = []
    for i in range(k):
        for j in range(k):
            s = xp[:, i:i + (Ho - 1) * stride + 1:stride,
                   j:j + (Wo - 1) * stride + 1:stride, :].reshape(-1)
            s = jnp.pad(s, (0, Lp - L)).reshape(rows_p, 128)   # lane-dense
            slices.append(s)

    out = pl.pallas_call(
        max9_kernel,
        out_shape=jax.ShapeDtypeStruct((rows_p, 128), x.dtype),
        grid=(rows_p // tr,),
        in_specs=[pl.BlockSpec((tr, 128), lambda i: (i, 0))] * (k * k),
        out_specs=pl.BlockSpec((tr, 128), lambda i: (i, 0)),
        compiler_params=pltpu.CompilerParams(
            dimension_semantics=("parallel",),
            vmem_limit_bytes=_VMEM_LIMIT),
    )(*slices)
    return out.reshape(-1)[:L].reshape(N, Ho, Wo, C)


def global_avgpool(x):
    N, H, W, C = x.shape
    xf = x.reshape(N, H * W, C)
    tc = C
    for cand in (512, 256, 128):
        if C % cand == 0:
            tc = cand
            break
    return pl.pallas_call(
        avgpool_kernel,
        out_shape=jax.ShapeDtypeStruct((N, C), jnp.float32),
        grid=(C // tc,),
        in_specs=[pl.BlockSpec((N, H * W, tc), lambda j: (0, 0, j))],
        out_specs=pl.BlockSpec((N, tc), lambda j: (0, j)),
        compiler_params=pltpu.CompilerParams(
            dimension_semantics=("parallel",),
            vmem_limit_bytes=_VMEM_LIMIT),
    )(xf)


# ----------------------------------------------------------------------------
# ResNet-50 parameter construction (deterministic, synthetic)
# ----------------------------------------------------------------------------
def _make_conv(key, kh, kw, cin, cout):
    std = (2.0 / (kh * kw * cin)) ** 0.5
    w = jax.random.normal(key, (kh, kw, cin, cout), jnp.float32) * std
    return w.astype(jnp.bfloat16)


def _make_bn(key, c, eps=1e-5):
    k1, k2, k3, k4 = jax.random.split(key, 4)
    gamma = 1.0 + 0.1 * jax.random.normal(k1, (c,), jnp.float32)
    beta = 0.1 * jax.random.normal(k2, (c,), jnp.float32)
    mean = 0.1 * jax.random.normal(k3, (c,), jnp.float32)
    var = 1.0 + 0.1 * jax.random.uniform(k4, (c,), jnp.float32)
    scale = gamma / jnp.sqrt(var + eps)          # BN folded (eval mode)
    bias = beta - mean * scale
    return scale, bias


def _make_bottleneck(key, cin, width, stride, downsample):
    ks = jax.random.split(key, 8)
    p = {
        "conv1": _make_conv(ks[0], 1, 1, cin, width),
        "bn1": _make_bn(ks[1], width),
        "conv2": _make_conv(ks[2], 3, 3, width, width),
        "bn2": _make_bn(ks[3], width),
        "conv3": _make_conv(ks[4], 1, 1, width, width * 4),
        "bn3": _make_bn(ks[5], width * 4),
        "stride": stride,
    }
    if downsample:
        p["dconv"] = _make_conv(ks[6], 1, 1, cin, width * 4)
        p["dbn"] = _make_bn(ks[7], width * 4)
    return p


def make_resnet50_params(key):
    cfg = [(3, 64, 1), (4, 128, 2), (6, 256, 2), (3, 512, 2)]
    key, k1, k2 = jax.random.split(key, 3)
    params = {"conv1": _make_conv(k1, 7, 7, 3, 64), "bn1": _make_bn(k2, 64)}
    cin = 64
    stages = []
    for (n_blocks, width, stride) in cfg:
        stage = []
        for b in range(n_blocks):
            key, sk = jax.random.split(key)
            s = stride if b == 0 else 1
            stage.append(_make_bottleneck(sk, cin, width, s, downsample=(b == 0)))
            cin = width * 4
        stages.append(stage)
    params["layers"] = stages
    return params


# ----------------------------------------------------------------------------
# Forward pass (== FeatureExtractor.forward)
# ----------------------------------------------------------------------------
def _bottleneck_forward(x, p):
    identity = x
    if "dconv" in p:
        identity = conv_bn_act(x, p["dconv"], *p["dbn"],
                               stride=p["stride"], pad=0, relu=False)
    out = conv_bn_act(x, p["conv1"], *p["bn1"], stride=1, pad=0, relu=True)
    out = conv_bn_act(out, p["conv2"], *p["bn2"], stride=p["stride"], pad=1, relu=True)
    # conv3 + BN + residual add + ReLU fused into a single GEMM epilogue.
    out = conv_bn_act(out, p["conv3"], *p["bn3"], stride=1, pad=0, relu=True,
                      residual=identity)
    return out


def feature_extractor_forward(x_nchw, params):
    # layout: accepts NCHW (PyTorch convention), runs NHWC / bf16 internally.
    x = jnp.transpose(x_nchw, (0, 2, 3, 1)).astype(jnp.bfloat16)
    x = conv_bn_act(x, params["conv1"], *params["bn1"], stride=2, pad=3, relu=True)
    x = maxpool_3x3_s2(x)
    for stage in params["layers"]:
        for blk in stage:
            x = _bottleneck_forward(x, blk)
    feats = global_avgpool(x)      # [N, 2048] f32; fc = nn.Identity()
    return feats


# ----------------------------------------------------------------------------
if __name__ == "__main__":
    key = jax.random.PRNGKey(0)
    pkey, xkey = jax.random.split(key)

    params = make_resnet50_params(pkey)
    # Small ResNet-compatible input: N=2, C=3, H=W=64 (NCHW like PyTorch).
    x = jax.random.normal(xkey, (2, 3, 64, 64), jnp.float32)

    feats = feature_extractor_forward(x, params)
    feats = jax.block_until_ready(feats)

    assert feats.shape == (2, 2048), feats.shape
    assert jnp.all(jnp.isfinite(feats))
    print("KERNEL_OK")
</pallas_src>

<mosaic_0001>
module attributes {stable_mosaic.version = 11 : i64} {
  func.func @matmul_bn_act_kernel(%arg0: i32, %arg1: i32, %arg2: i32, %arg3: memref<512x256xbf16, #tpu.memory_space<vmem>>, %arg4: memref<256x128xbf16, #tpu.memory_space<vmem>>, %arg5: memref<2x128xf32, #tpu.memory_space<vmem>>, %arg6: memref<512x128xbf16, #tpu.memory_space<vmem>>, %arg7: memref<512x128xf32, #tpu.memory_space<vmem>>) attributes {dimension_semantics = [#tpu.dimension_semantics<parallel>, #tpu.dimension_semantics<parallel>, #tpu.dimension_semantics<arbitrary>], iteration_bounds = array<i64: 4, 1, 1>, scalar_prefetch = 0 : i64, scratch_operands = 1 : i64, tpu.core_type = #tpu.core_type<tc>, window_params = [{transform_indices = @transform_0, window_bounds = array<i64: 512, 256>}, {transform_indices = @transform_1, window_bounds = array<i64: 256, 128>}, {transform_indices = @transform_2, window_bounds = array<i64: 2, 128>}, {transform_indices = @transform_3, window_bounds = array<i64: 512, 128>}]} {
    %c0_i32 = arith.constant 0 : i32
    %0 = arith.cmpi eq, %arg2, %c0_i32 : i32
    %1 = arith.extui %0 : i1 to i32
    %c0_i32_0 = arith.constant 0 : i32
    %2 = arith.cmpi ne, %1, %c0_i32_0 : i32
    scf.if %2 {
      %cst_10 = arith.constant 0.000000e+00 : f32
      %12 = vector.broadcast %cst_10 : f32 to vector<512x128xf32>
      %c0_11 = arith.constant 0 : index
      %c0_12 = arith.constant 0 : index
      %13 = vector.load %arg7[%c0_11, %c0_12] : memref<512x128xf32, #tpu.memory_space<vmem>>, vector<512x128xf32>
      tpu.vector_store %arg7[%c0_11, %c0_12], %12 {strides = array<i32>} : memref<512x128xf32, #tpu.memory_space<vmem>>, vector<512x128xf32>,
    } else {
    }
    %c0 = arith.constant 0 : index
    %c0_1 = arith.constant 0 : index
    %3 = vector.load %arg7[%c0, %c0_1] : memref<512x128xf32, #tpu.memory_space<vmem>>, vector<512x128xf32>
    %c0_2 = arith.constant 0 : index
    %c0_3 = arith.constant 0 : index
    %4 = vector.load %arg3[%c0_2, %c0_3] : memref<512x256xbf16, #tpu.memory_space<vmem>>, vector<512x256xbf16>
    %c0_4 = arith.constant 0 : index
    %c0_5 = arith.constant 0 : index
    %5 = vector.load %arg4[%c0_4, %c0_5] : memref<256x128xbf16, #tpu.memory_space<vmem>>, vector<256x128xbf16>
    %cst = arith.constant dense<0.000000e+00> : vector<512x128xf32>
    %6 = tpu.matmul %4, %5, %cst {dimension_numbers = #tpu.dot_dimension_numbers<[1], [0], [0], [1], [0, 0, 1, 1], [], []>} : vector<512x256xbf16>, vector<256x128xbf16>, vector<512x128xf32> -> vector<512x128xf32>
    %7 = arith.addf %3, %6 : vector<512x128xf32>
    %c0_6 = arith.constant 0 : index
    %c0_7 = arith.constant 0 : index
    %8 = vector.load %arg7[%c0_6, %c0_7] : memref<512x128xf32, #tpu.memory_space<vmem>>, vector<512x128xf32>
    tpu.vector_store %arg7[%c0_6, %c0_7], %7 {strides = array<i32>} : memref<512x128xf32, #tpu.memory_space<vmem>>, vector<512x128xf32>,
    %c0_i32_8 = arith.constant 0 : i32
    %9 = arith.cmpi eq, %arg2, %c0_i32_8 : i32
    %10 = arith.extui %9 : i1 to i32
    %c0_i32_9 = arith.constant 0 : i32
    %11 = arith.cmpi ne, %10, %c0_i32_9 : i32
    scf.if %11 {
      %c0_10 = arith.constant 0 : index
      %c0_11 = arith.constant 0 : index
      %12 = vector.load %arg5[%c0_10, %c0_11] : memref<2x128xf32, #tpu.memory_space<vmem>>, vector<2x128xf32>
      %c0_12 = arith.constant 0 : index
      %c0_13 = arith.constant 0 : index
      %13 = vector.load %arg7[%c0_12, %c0_13] : memref<512x128xf32, #tpu.memory_space<vmem>>, vector<512x128xf32>
      %14 = vector.extract_strided_slice %12 {offsets = [0, 0], sizes = [1, 128], strides = [1, 1]} : vector<2x128xf32> to vector<1x128xf32>
      %15 = vector.shape_cast %14 : vector<1x128xf32> to vector<128xf32>
      %16 = vector.shape_cast %15 : vector<128xf32> to vector<1x128xf32>
      %17 = vector.broadcast %16 : vector<1x128xf32> to vector<512x128xf32>
      %18 = arith.mulf %13, %17 : vector<512x128xf32>
      %19 = vector.extract_strided_slice %12 {offsets = [1, 0], sizes = [1, 128], strides = [1, 1]} : vector<2x128xf32> to vector<1x128xf32>
      %20 = vector.shape_cast %19 : vector<1x128xf32> to vector<128xf32>
      %21 = vector.shape_cast %20 : vector<128xf32> to vector<1x128xf32>
      %22 = vector.broadcast %21 : vector<1x128xf32> to vector<512x128xf32>
      %23 = arith.addf %18, %22 : vector<512x128xf32>
      %cst_14 = arith.constant 0.000000e+00 : f32
      %24 = vector.broadcast %cst_14 : f32 to vector<512x128xf32>
      %25 = arith.maximumf %23, %24 : vector<512x128xf32>
      %26 = arith.truncf %25 : vector<512x128xf32> to vector<512x128xbf16>
      %c0_15 = arith.constant 0 : index
      %c0_16 = arith.constant 0 : index
      %27 = vector.load %arg6[%c0_15, %c0_16] : memref<512x128xbf16, #tpu.memory_space<vmem>>, vector<512x128xbf16>
      tpu.vector_store %arg6[%c0_15, %c0_16], %26 {strides = array<i32>} : memref<512x128xbf16, #tpu.memory_space<vmem>>, vector<512x128xbf16>,
    } else {
    }
    return
  }
  func.func @transform_0(%arg0: i32, %arg1: i32, %arg2: i32) -> (i32, i32) {
    %c0_i32 = arith.constant 0 : i32
    return %arg0, %arg2 : i32, i32
  }
  func.func @transform_1(%arg0: i32, %arg1: i32, %arg2: i32) -> (i32, i32) {
    %c0_i32 = arith.constant 0 : i32
    return %arg2, %arg1 : i32, i32
  }
  func.func @transform_2(%arg0: i32, %arg1: i32, %arg2: i32) -> (i32, i32) {
    %c0_i32 = arith.constant 0 : i32
    %c0_i32_0 = arith.constant 0 : i32
    return %c0_i32, %arg1 : i32, i32
  }
  func.func @transform_3(%arg0: i32, %arg1: i32, %arg2: i32) -> (i32, i32) {
    %c0_i32 = arith.constant 0 : i32
    return %arg0, %arg1 : i32, i32
  }
}

</mosaic_0001>

<bundles_post_ra>
// kernel: tpu_custom_call.1
= control target key start
LH: loop header
LB: loop body
LE: loop exit
PB: predicated region body
PF: predicated region fallthrough
CT: control target
= control target key end

     0   :  { %8 = vsyncpa [#allocation4], 0  ;;  %s3308_s0 = inlined_call_operand.hbm [shape: bf16[2048,256], index: 0, kind: input, shape index: {}]   ;;  %s3309_s1 = inlined_call_operand.hbm [shape: bf16[256,128], index: 1, kind: input, shape index: {}]   ;;  %s3310_s2 = inlined_call_operand.vmem [shape: f32[2,128], index: 2, kind: input, shape index: {}]   ;;  %s3311_s3 = inlined_call_operand.hbm [shape: bf16[2048,128], index: 3, kind: output, shape index: {}]  }
   0x1   :  { %10 = vsyncpa [#allocation4 + $0x1], 0 }
   0x2   :  { %11 = vsyncpa [#allocation7], 0 }
   0x3   :  { %12 = vsyncpa [#allocation5], 0 }
   0x4   :  { %14 = vsyncpa [#allocation5 + $0x1], 0  ;;  %s2860_s12 = smov 0   ;;  %s2862_s13 = smov 0  }
   0x5   :  { %s2864_s14 = smov 0   ;;  %s2866_s15 = smov 0  }
   0x6   :  { %s2868_s16 = smov 0   ;;  %s2870_s17 = smov 0  }
   0x7 LB: > { %s2045_s18 = sadd.s32 4294967295, %s2828_s17   ;;  %s2046_s19 = sadd.s32 4294967294, %s2828_s17   ;;  %s2828_s17 = sphi %s2870_s17, %s20_s17   ;;  %s2824_s16 = sphi %s2868_s16, %s3328_s16   ;;  %s2820_s15 = sphi %s2866_s15, %s3327_s15   ;;  %s2816_s14 = sphi %s2864_s14, %s3326_s14   ;;  %s2812_s13 = sphi %s2862_s13, %s3325_s13   ;;  %s2808_s12 = sphi %s2860_s12, %s3324_s12  }
   0x8   : > { %p61_p0 = scmp.ne.s32.totalorder %s2812_s13, %s2808_s12  ;;  %p2894_p1 = scmp.eq.s32.totalorder %s2045_s18, 0 }
   0x9   : > { %p2898_p2 = scmp.eq.s32.totalorder %s2045_s18, 3  ;;  %p147_p3 = scmp.eq.s32.totalorder %s2046_s19, 3 }
   0xa   : > { %p2904_p4 = por %p2894_p1, %p61_p0  ;;  %p2047_p5 = scmp.ge.s32.totalorder %s2828_s17, 1 }
   0xb   : > { %p2909_p6 = por %p147_p3, %p61_p0  ;;  %p154_p7 = scmp.lt.s32.totalorder %s2828_s17, 5 }
   0xc   : > { %s2830_s25 = smov [#allocation6]   ;;  %s39_s28 = sadd.s32 1, %s2824_s16 }
   0xd   : > { %s3316_s23 = scalar_select %p2909_p6, 1, 0 }
   0xe   : > { %p2914_p8 = pnand %p2047_p5, %p154_p7  ;;  %s170_s26 = sshll.u32 %s2830_s25, 4  ;;  %s171_s26 = int_to_ptr.vmem [resolvable:$true] %s170_s26 }
   0xf   : > { %s2701_s29 = scalar_lea.vmem %s171_s26, 2048  ;;  %p2709_p3 = scmp.lt.s32.totalorder %s171_s26, %s171_s26 }
  0x10   : > { %p2506_p9 = pneg %p2914_p8  ;;  %p2702_p12 = scmp.ne.s32.totalorder %s171_s26, %s2701_s29 }
  0x11   : > { %p2710_p5 = scmp.lt.s32.totalorder %s2701_s29, %s2701_s29 }
  0x12   : > { %p2922_p10 = pnand %p2506_p9, %p2894_p1 }
  0x13   : > { %p2711_p7 = por %p2710_p5, %p2709_p3 }
  0x14   : > { %p2692_p11 = pneg %p2922_p10 }
  0x16   : > { %p2704_p13 = pnand %p2702_p12, %p2692_p11 }
  0x18   : > { %p2705_p0 = pneg %p2704_p13 }
  0x1a   : > { %p2712_p6 = pnand %p2711_p7, %p2705_p0 }
  0x1c   : > { %2715 = shalt.err (!%p2712_p6)
}
  0x1d   : > { %s2831_s30 = smov 64   ;;  %s2832_s4 = smov 4  }
  0x1e   : > { %2509 = dma.hbm_to_vmem [thread:$0]  (!%p2922_p10), %s3309_s1, 2048, %s171_s26, [#allocation7], %s2831_s30, %s2831_s30, %s2832_s4  }
  0x1f   : > { %p41_p9 = scmp.ge.s32.totalorder %s39_s28, 4  ;;  %s48_s7 = sadd.s32 1, %s2816_s14 }
  0x20   : > { %p55_p6 = scmp.ne.s32.totalorder %s2816_s14, %s2812_s13  ;;  %p56_p11 = scmp.eq.s32.totalorder %s2828_s17, 0 }
  0x21   : > { %s3330_s28 = smov (%p41_p9, %s39_s28), 0  ;;  %p2519_p0 = scmp.lt.s32.totalorder %s2828_s17, 4 }
  0x22   : > { %p2940_p12 = por %p56_p11, %p55_p6  ;;  %p2946_p13 = por %p2898_p2, %p55_p6 }
  0x23   : > { %s43_s10 = ssub.s32 %s2824_s16, %s3330_s28  ;;  %s191_s11 = sand.u32 1, %s2816_s14  }
  0x24   : > { %s3320_s9 = scalar_select %p2946_p13, 1, 0 }
  0x25   : > { %p46_p10 = scmp.eq.s32.totalorder %s43_s10, 0  ;;  %s2051_s18 = sshll.u32 %s191_s11, 9 }
  0x26   : > { %s2209_s25 = sshll.u32 %s2824_s16, 13  ;;  %s195_s30 = scalar_lea.vmem [#allocation3], %s2051_s18 }
  0x27   : > { %s2955_s19 = scalar_select %p46_p10, %s2816_s14, %s48_s7  }
  0x28   : > { %s204_s29 = scalar_lea.hbm %s3308_s0, %s2209_s25  ;;  %s205_s4 = sshll.u32 %s195_s30, 4  ;;  %s206_s4 = int_to_ptr.vmem [resolvable:$true] %s205_s4 }
  0x29   : > { %p2963_p2 = pnand %p2519_p0, %p2940_p12  ;;  %s192_s5 = scalar_lea.sflag [#allocation4], %s191_s11 }
  0x2a   : > { %s2729_s6 = scalar_lea.vmem %s206_s4, 8192  ;;  %s2833_s7 = smov [#allocation3]  }
  0x2b   : > { %p2718_p3 = pneg %p2963_p2  ;;  %p2730_p5 = scmp.ne.s32.totalorder %s206_s4, %s2729_s6 }
  0x2c   : > { %s2734_s10 = sshll.u32 %s2833_s7, 4  ;;  %s2735_s10 = int_to_ptr.vmem [resolvable:$false] %s2734_s10 }
  0x2d   : > { %p2732_p7 = pnand %p2730_p5, %p2718_p3  ;;  %s2736_s25 = scalar_lea.vmem %s2735_s10, 16384 }
  0x2e   : > { %p2737_p6 = scmp.lt.s32.totalorder %s206_s4, %s2735_s10  ;;  %p2738_p11 = scmp.lt.s32.totalorder %s2736_s25, %s2729_s6 }
  0x2f   : > { %p2733_p9 = pneg %p2732_p7 }
  0x30   : > { %p2739_p10 = por %p2738_p11, %p2737_p6 }
  0x32   : > { %p2740_p13 = pnand %p2739_p10, %p2733_p9 }
  0x34   : > { %2743 = shalt.err (!%p2740_p13)
}
  0x35   : > { %s2834_s8 = smov 128   ;;  %s2835_s18 = smov 8  }
  0x36   : > { %2513 = dma.hbm_to_vmem [thread:$0]  (!%p2963_p2), %s204_s29, 8192, %s206_s4, %s192_s5, %s2834_s8, %s2834_s8, %s2835_s18  }
  0x37   : > { %217 = sbr.rel (%p2914_p8) target bundleno = 467 (0x1d3), region = 32  ;;  %s2974_s11 = sand.u32 (!%p2914_p8), 1, %s2812_s13  }
  0x38   : > { %s2056_s26 = sshll.u32 (!%p2914_p8), %s2974_s11, 9  ;;  %s220_s27 = scalar_lea.sflag (!%p2914_p8), [#allocation4], %s2974_s11 }
  0x39   : > { %s2978_s30 = scalar_lea.vmem (!%p2914_p8), [#allocation3], %s2056_s26 }
  0x3c   : > { %2795 = dma.done.wait (%p2904_p4), %s220_s27, 8192  }
  0x3d   : > { %2797 = vsyncadd (%p2904_p4), %s220_s27, 4294959104 }
  0x3e   : > { %2799 = dma.done.wait (%p2894_p1), [#allocation7], 2048  }
  0x3f   : > { %2801 = vsyncadd (%p2894_p1), [#allocation7], 4294965248  ;;  %v2836_v0 = vmov 0   ;;  %v2578_v1 = vld [vmem:[#allocation6 + $0x38] sm:$0xff]   ;;  %v2579_v2 = vld [vmem:[#allocation6 + $0x30] sm:$0xff]   ;;  %s2058_s24 = sshll.u32 %s2974_s11, 8 }
  0x40   : > { %907 = vmatprep.subr.bf16.mxu0 %v2836_v0  ;;  %2466 = vmatprep.subr.bf16.mxu1 %v2836_v0  ;;  %v2580_v3 = vld [vmem:[#allocation6 + $0x28] sm:$0xff]   ;;  %v2581_v4 = vld [vmem:[#allocation6 + $0x20] sm:$0xff]   ;;  %v2582_v5 = vld [vmem:[#allocation6 + $0x18] sm:$0xff]   ;;  %s3104_s29 = scalar_lea.vmem [#allocation8], %s2058_s24  ;;  %s2274_s4 = sshll.u32 %s2820_s15, 12 }
  0x41   : > { %908 = vmatpush1.bf16.msra.mxu0 %v2578_v1  ;;  %2482 = vmatpush1.bf16.msra.mxu1 %v2578_v1  ;;  %v2596_v6 = vld [vmem:[%s2978_s30 + $0x4] ss:$8 sps:$4 sm:$0xff]   ;;  %v2583_v7 = vld [vmem:[#allocation6 + $0x10] sm:$0xff]   ;;  %v2586_v11 = vld [vmem:[#allocation6 + $0x78] sm:$0xff]   ;;  %s1927_s21 = sshll.u32 %s3104_s29, 4  ;;  %s3257_s7 = scalar_lea.hbm %s3311_s3, %s2274_s4  ;;  %s3259_s21 = int_to_ptr.vmem [resolvable:$true] %s1927_s21 }
  0x42   : > { %909 = vmatprep.subr.bf16.mxu0 %v2836_v0  ;;  %2467 = vmatprep.subr.bf16.mxu1 %v2836_v0  ;;  %v2599_v8 = vld [vmem:[%s2978_s30 + $0x104] ss:$8 sps:$4 sm:$0xff]   ;;  %v2587_v12 = vld [vmem:[#allocation6 + $0x70] sm:$0xff]   ;;  %v2590_v15 = vld [vmem:[#allocation6 + $0x58] sm:$0xff]   ;;  %s1913_s15 = scalar_lea.sflag [#allocation5], %s2974_s11  ;;  %s2744_s10 = scalar_lea.vmem %s3259_s21, 4096 }
  0x43   : > { %939 = vmatprep.mubr.bf16.mxu0 %v2596_v6  ;;  %1067 = vmatprep.mubr.bf16.mxu1 %v2599_v8  ;;  %v2584_v9 = vld [vmem:[#allocation6 + $0x8] sm:$0xff]   ;;  %v2585_v10 = vld [vmem:[#allocation6] sm:$0xff]   ;;  %v2591_v16 = vld [vmem:[#allocation6 + $0x50] sm:$0xff]   ;;  %p2745_p1 = scmp.ne.s32.totalorder %s3259_s21, %s2744_s10  ;;  %p3322_p4 = scmp.ne.s32.totalorder %s3320_s9, 0 }
  0x44   : > { %v2588_v13 = vld [vmem:[#allocation6 + $0x68] sm:$0xff]   ;;  %v2589_v14 = vld [vmem:[#allocation6 + $0x60] sm:$0xff]   ;;  %v2600_v21 = vld [vmem:[%s2978_s30 + $0x14] ss:$8 sps:$4 sm:$0xff]   ;;  %s2837_s25 = smov [#allocation8]  }
  0x45   : > { %910 = vmatpush1.bf16.msra.mxu0 %v2579_v2  ;;  %2483 = vmatpush1.bf16.msra.mxu1 %v2579_v2  ;;  %v2592_v17 = vld [vmem:[#allocation6 + $0x48] sm:$0xff]   ;;  %v2593_v18 = vld [vmem:[#allocation6 + $0x40] sm:$0xff]   ;;  %v2602_v22 = vld [vmem:[%s2978_s30 + $0x114] ss:$8 sps:$4 sm:$0xff]   ;;  %p2746_p8 = pnand %p2745_p1, %p3322_p4  ;;  %s2748_s8 = sshll.u32 %s2837_s25, 4  ;;  %s2749_s8 = int_to_ptr.vmem [resolvable:$false] %s2748_s8 }
  0x46   : > { %911 = vmatprep.subr.bf16.mxu0 %v2836_v0  ;;  %2468 = vmatprep.subr.bf16.mxu1 %v2836_v0  ;;  %v2594_v19 = vld [vmem:[%s2978_s30] ss:$8 sps:$4 sm:$0xff]   ;;  %v2604_v23 = vld [vmem:[%s2978_s30 + $0x10] ss:$8 sps:$4 sm:$0xff]   ;;  %v2606_v25 = vld [vmem:[%s2978_s30 + $0x24] ss:$8 sps:$4 sm:$0xff]   ;;  %p2751_p13 = scmp.lt.s32.totalorder %s3259_s21, %s2749_s8 }
  0x47   : > { %v2597_v20 = vld [vmem:[%s2978_s30 + $0x100] ss:$8 sps:$4 sm:$0xff]   ;;  %v2605_v24 = vld [vmem:[%s2978_s30 + $0x110] ss:$8 sps:$4 sm:$0xff]   ;;  %v2608_v26 = vld [vmem:[%s2978_s30 + $0x124] ss:$8 sps:$4 sm:$0xff]   ;;  %p2747_p12 = pneg %p2746_p8 }
  0x48   : > { %v2610_v27 = vld [vmem:[%s2978_s30 + $0x20] ss:$8 sps:$4 sm:$0xff]   ;;  %v2612_v29 = vld [vmem:[%s2978_s30 + $0x34] ss:$8 sps:$4 sm:$0xff]   ;;  %v2616_v31 = vld [vmem:[%s2978_s30 + $0x30] ss:$8 sps:$4 sm:$0xff]  }
  0x49   : > { %912 = vmatpush1.bf16.msra.mxu0 %v2580_v3  ;;  %2484 = vmatpush1.bf16.msra.mxu1 %v2580_v3  ;;  %v2611_v28 = vld [vmem:[%s2978_s30 + $0x120] ss:$8 sps:$4 sm:$0xff]   ;;  %v2614_v30 = vld [vmem:[%s2978_s30 + $0x134] ss:$8 sps:$4 sm:$0xff]   ;;  %v2617_v32 = vld [vmem:[%s2978_s30 + $0x130] ss:$8 sps:$4 sm:$0xff]  }
  0x4a   : > { %913 = vmatprep.subr.bf16.mxu0 %v2836_v0  ;;  %2469 = vmatprep.subr.bf16.mxu1 %v2836_v0  ;;  %v2618_v33 = vld [vmem:[%s2978_s30 + $0x44] ss:$8 sps:$4 sm:$0xff]   ;;  %v2622_v35 = vld [vmem:[%s2978_s30 + $0x40] ss:$8 sps:$4 sm:$0xff]   ;;  %v2624_v37 = vld [vmem:[%s2978_s30 + $0x54] ss:$8 sps:$4 sm:$0xff]  }
  0x4b   : > { %v2620_v34 = vld [vmem:[%s2978_s30 + $0x144] ss:$8 sps:$4 sm:$0xff]   ;;  %v2623_v36 = vld [vmem:[%s2978_s30 + $0x140] ss:$8 sps:$4 sm:$0xff]   ;;  %v2626_v38 = vld [vmem:[%s2978_s30 + $0x154] ss:$8 sps:$4 sm:$0xff]  }
  0x4c   : > { %v2628_v39 = vld [vmem:[%s2978_s30 + $0x50] ss:$8 sps:$4 sm:$0xff]   ;;  %v2630_v41 = vld [vmem:[%s2978_s30 + $0x64] ss:$8 sps:$4 sm:$0xff]   ;;  %v2634_v43 = vld [vmem:[%s2978_s30 + $0x60] ss:$8 sps:$4 sm:$0xff]  }
  0x4d   : > { %914 = vmatpush1.bf16.msra.mxu0 %v2581_v4  ;;  %2485 = vmatpush1.bf16.msra.mxu1 %v2581_v4  ;;  %v2629_v40 = vld [vmem:[%s2978_s30 + $0x150] ss:$8 sps:$4 sm:$0xff]   ;;  %v2632_v42 = vld [vmem:[%s2978_s30 + $0x164] ss:$8 sps:$4 sm:$0xff]   ;;  %v2635_v44 = vld [vmem:[%s2978_s30 + $0x160] ss:$8 sps:$4 sm:$0xff]  }
  0x4e   : > { %915 = vmatprep.subr.bf16.mxu0 %v2836_v0  ;;  %2470 = vmatprep.subr.bf16.mxu1 %v2836_v0  ;;  %v2636_v45 = vld [vmem:[%s2978_s30 + $0x74] ss:$8 sps:$4 sm:$0xff]   ;;  %v2640_v47 = vld [vmem:[%s2978_s30 + $0x70] ss:$8 sps:$4 sm:$0xff]   ;;  %v2642_v49 = vld [vmem:[%s2978_s30 + $0x84] ss:$8 sps:$4 sm:$0xff]  }
  0x4f   : > { %v2638_v46 = vld [vmem:[%s2978_s30 + $0x174] ss:$8 sps:$4 sm:$0xff]   ;;  %v2641_v48 = vld [vmem:[%s2978_s30 + $0x170] ss:$8 sps:$4 sm:$0xff]   ;;  %v2644_v50 = vld [vmem:[%s2978_s30 + $0x184] ss:$8 sps:$4 sm:$0xff]  }
  0x50   : > { %v2646_v51 = vld [vmem:[%s2978_s30 + $0x80] ss:$8 sps:$4 sm:$0xff]   ;;  %v2648_v53 = vld [vmem:[%s2978_s30 + $0x94] ss:$8 sps:$4 sm:$0xff]   ;;  %v2652_v55 = vld [vmem:[%s2978_s30 + $0x90] ss:$8 sps:$4 sm:$0xff]  }
  0x51   : > { %916 = vmatpush1.bf16.msra.mxu0 %v2582_v5  ;;  %2486 = vmatpush1.bf16.msra.mxu1 %v2582_v5  ;;  %v2647_v52 = vld [vmem:[%s2978_s30 + $0x180] ss:$8 sps:$4 sm:$0xff]   ;;  %v2650_v54 = vld [vmem:[%s2978_s30 + $0x194] ss:$8 sps:$4 sm:$0xff]   ;;  %v2653_v56 = vld [vmem:[%s2978_s30 + $0x190] ss:$8 sps:$4 sm:$0xff]  }
  0x52   : > { %917 = vmatprep.subr.bf16.mxu0 %v2836_v0  ;;  %2471 = vmatprep.subr.bf16.mxu1 %v2836_v0  ;;  %v2654_v57 = vld [vmem:[%s2978_s30 + $0xa4] ss:$8 sps:$4 sm:$0xff]   ;;  %v2658_v59 = vld [vmem:[%s2978_s30 + $0xa0] ss:$8 sps:$4 sm:$0xff]   ;;  %v2660_v61 = vld [vmem:[%s2978_s30 + $0xb4] ss:$8 sps:$4 sm:$0xff]  }
  0x53   : > { %v2656_v58 = vld [vmem:[%s2978_s30 + $0x1a4] ss:$8 sps:$4 sm:$0xff]   ;;  %v2659_v60 = vld [vmem:[%s2978_s30 + $0x1a0] ss:$8 sps:$4 sm:$0xff]   ;;  %v2662_v62 = vld [vmem:[%s2978_s30 + $0x1b4] ss:$8 sps:$4 sm:$0xff]  }
  0x54   : > { %v2664_v63 = vld [vmem:[%s2978_s30 + $0xb0] ss:$8 sps:$4 sm:$0xff]   ;;  %v2666_v1 = vld [vmem:[%s2978_s30 + $0xc4] ss:$8 sps:$4 sm:$0xff]   ;;  %v2670_v3 = vld [vmem:[%s2978_s30 + $0xc0] ss:$8 sps:$4 sm:$0xff]  }
  0x55   : > { %918 = vmatpush1.bf16.msra.mxu0 %v2583_v7  ;;  %2487 = vmatpush1.bf16.msra.mxu1 %v2583_v7  ;;  %v2668_v2 = vld [vmem:[%s2978_s30 + $0x1c4] ss:$8 sps:$4 sm:$0xff]   ;;  %v2671_v4 = vld [vmem:[%s2978_s30 + $0x1c0] ss:$8 sps:$4 sm:$0xff]   ;;  %v2672_v5 = vld [vmem:[%s2978_s30 + $0xd4] ss:$8 sps:$4 sm:$0xff]  }
  0x56   : > { %919 = vmatprep.subr.bf16.mxu0 %v2836_v0  ;;  %2472 = vmatprep.subr.bf16.mxu1 %v2836_v0  ;;  %v2674_v6 = vld [vmem:[%s2978_s30 + $0x1d4] ss:$8 sps:$4 sm:$0xff]   ;;  %v2676_v7 = vld [vmem:[%s2978_s30 + $0xd0] ss:$8 sps:$4 sm:$0xff]   ;;  %s2750_s18 = scalar_lea.vmem %s2749_s8, 8192 }
  0x57   : > { %v2677_v8 = vld [vmem:[%s2978_s30 + $0x1d0] ss:$8 sps:$4 sm:$0xff]   ;;  %p2752_p0 = scmp.lt.s32.totalorder %s2750_s18, %s2744_s10 }
  0x59   : > { %920 = vmatpush1.bf16.msra.mxu0 %v2584_v9  ;;  %2488 = vmatpush1.bf16.msra.mxu1 %v2584_v9  ;;  %v2678_v9 = vld [vmem:[%s2978_s30 + $0xe4] ss:$8 sps:$4 sm:$0xff]   ;;  %p2753_p2 = por %p2752_p0, %p2751_p13 }
  0x5a   : > { %921 = vmatprep.subr.bf16.mxu0 %v2836_v0  ;;  %2473 = vmatprep.subr.bf16.mxu1 %v2836_v0 }
  0x5b   : > { %p2754_p3 = pnand %p2753_p2, %p2747_p12 }
  0x5d   : > { %922 = vmatpush1.bf16.msra.mxu0 %v2585_v10  ;;  %2489 = vmatpush1.bf16.msra.mxu1 %v2585_v10  ;;  %v2680_v10 = vld [vmem:[%s2978_s30 + $0x1e4] ss:$8 sps:$4 sm:$0xff]  }
  0x5e   : > { %923 = vmatprep.subr.bf16.mxu0 %v2836_v0  ;;  %2474 = vmatprep.subr.bf16.mxu1 %v2836_v0 }
  0x61   : > { %924 = vmatpush2.bf16.msra.mxu0 %v2586_v11  ;;  %2490 = vmatpush2.bf16.msra.mxu1 %v2586_v11  ;;  %v2682_v11 = vld [vmem:[%s2978_s30 + $0xe0] ss:$8 sps:$4 sm:$0xff]  }
  0x62   : > { %925 = vmatprep.subr.bf16.mxu0 %v2836_v0  ;;  %2475 = vmatprep.subr.bf16.mxu1 %v2836_v0 }
  0x65   : > { %926 = vmatpush2.bf16.msra.mxu0 %v2587_v12  ;;  %2491 = vmatpush2.bf16.msra.mxu1 %v2587_v12  ;;  %v2683_v12 = vld [vmem:[%s2978_s30 + $0x1e0] ss:$8 sps:$4 sm:$0xff]  }
  0x66   : > { %927 = vmatprep.subr.bf16.mxu0 %v2836_v0  ;;  %2476 = vmatprep.subr.bf16.mxu1 %v2836_v0 }
  0x69   : > { %928 = vmatpush2.bf16.msra.mxu0 %v2588_v13  ;;  %2492 = vmatpush2.bf16.msra.mxu1 %v2588_v13  ;;  %v2684_v13 = vld [vmem:[%s2978_s30 + $0xf4] ss:$8 sps:$4 sm:$0xff]  }
  0x6a   : > { %929 = vmatprep.subr.bf16.mxu0 %v2836_v0  ;;  %2477 = vmatprep.subr.bf16.mxu1 %v2836_v0 }
  0x6d   : > { %930 = vmatpush2.bf16.msra.mxu0 %v2589_v14  ;;  %2493 = vmatpush2.bf16.msra.mxu1 %v2589_v14  ;;  %v2686_v14 = vld [vmem:[%s2978_s30 + $0x1f4] ss:$8 sps:$4 sm:$0xff]  }
  0x6e   : > { %931 = vmatprep.subr.bf16.mxu0 %v2836_v0  ;;  %2478 = vmatprep.subr.bf16.mxu1 %v2836_v0 }
  0x71   : > { %932 = vmatpush2.bf16.msra.mxu0 %v2590_v15  ;;  %2494 = vmatpush2.bf16.msra.mxu1 %v2590_v15  ;;  %v2688_v15 = vld [vmem:[%s2978_s30 + $0xf0] ss:$8 sps:$4 sm:$0xff]  }
  0x72   : > { %933 = vmatprep.subr.bf16.mxu0 %v2836_v0  ;;  %2479 = vmatprep.subr.bf16.mxu1 %v2836_v0 }
  0x75   : > { %934 = vmatpush2.bf16.msra.mxu0 %v2591_v16  ;;  %2495 = vmatpush2.bf16.msra.mxu1 %v2591_v16  ;;  %v2689_v16 = vld [vmem:[%s2978_s30 + $0x1f0] ss:$8 sps:$4 sm:$0xff]  }
  0x76   : > { %935 = vmatprep.subr.bf16.mxu0 %v2836_v0  ;;  %2480 = vmatprep.subr.bf16.mxu1 %v2836_v0 }
  0x79   : > { %936 = vmatpush2.bf16.msra.mxu0 %v2592_v17  ;;  %2496 = vmatpush2.bf16.msra.mxu1 %v2592_v17  ;;  %v1392_v17 = vlaneseq }
  0x7a   : > { %937 = vmatprep.subr.bf16.mxu0 %v2836_v0  ;;  %2481 = vmatprep.subr.bf16.mxu1 %v2836_v0  ;;  %v2665_v0 = vld [vmem:[%s2978_s30 + $0x1b0] ss:$8 sps:$4 sm:$0xff]  }
  0x7d   : > { %938 = vmatpush2.bf16.msra.mxu0 %v2593_v18  ;;  %2497 = vmatpush2.bf16.msra.mxu1 %v2593_v18  ;;  %v1393_v18 = vshrl.u32 %v1392_v17, 7 }
  0x80   : > { %940 = vmatmul.mubr.bf16.vlgmr.msra.gmra.mxu0 %v2594_v19  ;;  %1068 = vmatmul.mubr.bf16.vlgmr.msra.gmra.mxu1 %v2597_v20  ;;  %v1394_v19 = vsub.s32 0, %v1393_v18  ;;  %v1327_v20 = vld [vmem:[%s3310_s2] sm:$0x3] }
  0x81   : > { %947 = vmatprep.mubr.bf16.mxu0 %v2600_v21  ;;  %1075 = vmatprep.mubr.bf16.mxu1 %v2602_v22  ;;  %v1462_v21 = vsub.s32 1, %v1393_v18 }
  0x82   : > { %v3087_v22 = vrot.slane %v1327_v20, %v1394_v19 }
  0x88   : > { %948 = vmatmul.mubr.bf16.gmra.mxu0 %v2604_v23  ;;  %1076 = vmatmul.mubr.bf16.gmra.mxu1 %v2605_v24  ;;  %v3089_v24 = vrot.slane %v1327_v20, %v1462_v21 }
  0x89   : > { %955 = vmatprep.mubr.bf16.mxu0 %v2606_v25  ;;  %1083 = vmatprep.mubr.bf16.mxu1 %v2608_v26 }
  0x90   : > { %956 = vmatmul.mubr.bf16.gmra.mxu0 %v2610_v27  ;;  %1084 = vmatmul.mubr.bf16.gmra.mxu1 %v2611_v28 }
  0x91   : > { %963 = vmatprep.mubr.bf16.mxu0 %v2612_v29  ;;  %1091 = vmatprep.mubr.bf16.mxu1 %v2614_v30 }
  0x98   : > { %964 = vmatmul.mubr.bf16.gmra.mxu0 %v2616_v31  ;;  %1092 = vmatmul.mubr.bf16.gmra.mxu1 %v2617_v32 }
  0x99   : > { %971 = vmatprep.mubr.bf16.mxu0 %v2618_v33  ;;  %1099 = vmatprep.mubr.bf16.mxu1 %v2620_v34 }
  0xa0   : > { %972 = vmatmul.mubr.bf16.gmra.mxu0 %v2622_v35  ;;  %1100 = vmatmul.mubr.bf16.gmra.mxu1 %v2623_v36 }
  0xa1   : > { %979 = vmatprep.mubr.bf16.mxu0 %v2624_v37  ;;  %1107 = vmatprep.mubr.bf16.mxu1 %v2626_v38 }
  0xa8   : > { %980 = vmatmul.mubr.bf16.gmra.mxu0 %v2628_v39  ;;  %1108 = vmatmul.mubr.bf16.gmra.mxu1 %v2629_v40 }
  0xa9   : > { %987 = vmatprep.mubr.bf16.mxu0 %v2630_v41  ;;  %1115 = vmatprep.mubr.bf16.mxu1 %v2632_v42 }
  0xb0   : > { %988 = vmatmul.mubr.bf16.gmra.mxu0 %v2634_v43  ;;  %1116 = vmatmul.mubr.bf16.gmra.mxu1 %v2635_v44 }
  0xb1   : > { %995 = vmatprep.mubr.bf16.mxu0 %v2636_v45  ;;  %1123 = vmatprep.mubr.bf16.mxu1 %v2638_v46 }
  0xb8   : > { %996 = vmatmul.mubr.bf16.gmra.mxu0 %v2640_v47  ;;  %1124 = vmatmul.mubr.bf16.gmra.mxu1 %v2641_v48 }
  0xb9   : > { %1003 = vmatprep.mubr.bf16.mxu0 %v2642_v49  ;;  %1131 = vmatprep.mubr.bf16.mxu1 %v2644_v50 }
  0xc0   : > { %1004 = vmatmul.mubr.bf16.gmra.mxu0 %v2646_v51  ;;  %1132 = vmatmul.mubr.bf16.gmra.mxu1 %v2647_v52 }
  0xc1   : > { %1011 = vmatprep.mubr.bf16.mxu0 %v2648_v53  ;;  %1139 = vmatprep.mubr.bf16.mxu1 %v2650_v54 }
  0xc8   : > { %1012 = vmatmul.mubr.bf16.gmra.mxu0 %v2652_v55  ;;  %1140 = vmatmul.mubr.bf16.gmra.mxu1 %v2653_v56 }
  0xc9   : > { %1019 = vmatprep.mubr.bf16.mxu0 %v2654_v57  ;;  %1147 = vmatprep.mubr.bf16.mxu1 %v2656_v58 }
  0xd0   : > { %1020 = vmatmul.mubr.bf16.gmra.mxu0 %v2658_v59  ;;  %1148 = vmatmul.mubr.bf16.gmra.mxu1 %v2659_v60 }
  0xd1   : > { %1027 = vmatprep.mubr.bf16.mxu0 %v2660_v61  ;;  %1155 = vmatprep.mubr.bf16.mxu1 %v2662_v62 }
  0xd8   : > { %1028 = vmatmul.mubr.bf16.gmra.mxu0 %v2664_v63  ;;  %1156 = vmatmul.mubr.bf16.gmra.mxu1 %v2665_v0 }
  0xd9   : > { %1035 = vmatprep.mubr.bf16.mxu0 %v2666_v1  ;;  %1163 = vmatprep.mubr.bf16.mxu1 %v2668_v2 }
  0xe0   : > { %1036 = vmatmul.mubr.bf16.gmra.mxu0 %v2670_v3  ;;  %1164 = vmatmul.mubr.bf16.gmra.mxu1 %v2671_v4 }
  0xe1   : > { %1043 = vmatprep.mubr.bf16.mxu0 %v2672_v5  ;;  %1171 = vmatprep.mubr.bf16.mxu1 %v2674_v6 }
  0xe8   : > { %1044 = vmatmul.mubr.bf16.gmra.mxu0 %v2676_v7  ;;  %1172 = vmatmul.mubr.bf16.gmra.mxu1 %v2677_v8 }
  0xe9   : > { %1051 = vmatprep.mubr.bf16.mxu0 %v2678_v9  ;;  %1179 = vmatprep.mubr.bf16.mxu1 %v2680_v10 }
  0xf0   : > { %1052 = vmatmul.mubr.bf16.gmra.mxu0 %v2682_v11  ;;  %1180 = vmatmul.mubr.bf16.gmra.mxu1 %v2683_v12 }
  0xf1   : > { %1059 = vmatprep.mubr.bf16.mxu0 %v2684_v13  ;;  %1187 = vmatprep.mubr.bf16.mxu1 %v2686_v14 }
  0xf8   : > { %1060 = vmatmul.mubr.bf16.gmra.mxu0 %v2688_v15  ;;  %1188 = vmatmul.mubr.bf16.gmra.mxu1 %v2689_v16 }
 0x140   : > { %v941_v23 = vpop.f32.mrf.mxu0  ;;  %v1069_v25 = vpop.f32.mrf.mxu1 }
 0x141   : > { %v1396_v26 = vmul.f32 %v3087_v22, %v941_v23  ;;  %v1428_v27 = vmul.f32 %v3087_v22, %v1069_v25 }
 0x142   : > { %v943_v28 = vpop.f32.mrf.mxu0  ;;  %v1071_v29 = vpop.f32.mrf.mxu1 }
 0x143   : > { %v1464_v30 = vadd.f32 %v3089_v24, %v1396_v26  ;;  %v1496_v31 = vadd.f32 %v3089_v24, %v1428_v27 }
 0x144   : > { %v944_v32 = vpop.f32.mrf.mxu0  ;;  %v1072_v33 = vpop.f32.mrf.mxu1 }
 0x145   : > { %v1397_v34 = vmul.f32 %v3087_v22, %v944_v32  ;;  %v1429_v35 = vmul.f32 %v3087_v22, %v1072_v33  ;;  %v1528_v40 = vmax.f32 %v1464_v30, 0.0  ;;  %v1560_v41 = vmax.f32 %v1496_v31, 0.0 }
 0x146   : > { %v946_v36 = vpop.f32.mrf.mxu0  ;;  %v1074_v37 = vpop.f32.mrf.mxu1 }
 0x147   : > { %v1465_v38 = vadd.f32 %v3089_v24, %v1397_v34  ;;  %v1497_v39 = vadd.f32 %v3089_v24, %v1429_v35 }
 0x148   : > { %v949_v42 = vpop.f32.mrf.mxu0  ;;  %v1077_v43 = vpop.f32.mrf.mxu1 }
 0x149   : > { %v1529_v44 = vmax.f32 %v1465_v38, 0.0  ;;  %v1561_v45 = vmax.f32 %v1497_v39, 0.0  ;;  %v1398_v46 = vmul.f32 %v3087_v22, %v949_v42  ;;  %v1430_v47 = vmul.f32 %v3087_v22, %v1077_v43 }
 0x14a   : > { %v951_v48 = vpop.f32.mrf.mxu0  ;;  %v1079_v49 = vpop.f32.mrf.mxu1 }
 0x14b   : > { %v2278_v50 = vpack.c.bf16 %v1529_v44, %v1528_v40  ;;  %v2358_v51 = vpack.c.bf16 %v1561_v45, %v1560_v41  ;;  %v1466_v52 = vadd.f32 %v3089_v24, %v1398_v46  ;;  %v1498_v53 = vadd.f32 %v3089_v24, %v1430_v47 }
 0x14c   : > { %v952_v54 = vpop.f32.mrf.mxu0  ;;  %v1080_v55 = vpop.f32.mrf.mxu1 }
 0x14d   : > { %2279 = vst [vmem:[%s3104_s29] sm:$0xff] %v2278_v50   ;;  %2450 = vst [vmem:[%s3104_s29 + $0x80] sm:$0xff] %v2358_v51   ;;  %v1399_v56 = vmul.f32 %v3087_v22, %v952_v54  ;;  %v1431_v57 = vmul.f32 %v3087_v22, %v1080_v55  ;;  %v1530_v62 = vmax.f32 %v1466_v52, 0.0  ;;  %v1562_v63 = vmax.f32 %v1498_v53, 0.0 }
 0x14e   : > { %v954_v58 = vpop.f32.mrf.mxu0  ;;  %v1082_v59 = vpop.f32.mrf.mxu1 }
 0x14f   : > { %v1467_v60 = vadd.f32 %v3089_v24, %v1399_v56  ;;  %v1499_v61 = vadd.f32 %v3089_v24, %v1431_v57 }
 0x150   : > { %v957_v0 = vpop.f32.mrf.mxu0  ;;  %v1085_v1 = vpop.f32.mrf.mxu1 }
 0x151   : > { %v1531_v2 = vmax.f32 %v1467_v60, 0.0  ;;  %v1563_v3 = vmax.f32 %v1499_v61, 0.0  ;;  %v1400_v4 = vmul.f32 %v3087_v22, %v957_v0  ;;  %v1432_v5 = vmul.f32 %v3087_v22, %v1085_v1 }
 0x152   : > { %v959_v6 = vpop.f32.mrf.mxu0  ;;  %v1087_v7 = vpop.f32.mrf.mxu1 }
 0x153   : > { %v2283_v8 = vpack.c.bf16 %v1531_v2, %v1530_v62  ;;  %v2363_v9 = vpack.c.bf16 %v1563_v3, %v1562_v63  ;;  %v1468_v10 = vadd.f32 %v3089_v24, %v1400_v4  ;;  %v1500_v11 = vadd.f32 %v3089_v24, %v1432_v5 }
 0x154   : > { %v960_v12 = vpop.f32.mrf.mxu0  ;;  %v1088_v13 = vpop.f32.mrf.mxu1 }
 0x155   : > { %2435 = vst [vmem:[%s3104_s29 + $0x8] sm:$0xff] %v2283_v8   ;;  %2451 = vst [vmem:[%s3104_s29 + $0x88] sm:$0xff] %v2363_v9   ;;  %v1401_v14 = vmul.f32 %v3087_v22, %v960_v12  ;;  %v1433_v15 = vmul.f32 %v3087_v22, %v1088_v13  ;;  %v1532_v20 = vmax.f32 %v1468_v10, 0.0  ;;  %v1564_v21 = vmax.f32 %v1500_v11, 0.0 }
 0x156   : > { %v962_v16 = vpop.f32.mrf.mxu0  ;;  %v1090_v17 = vpop.f32.mrf.mxu1 }
 0x157   : > { %v1469_v18 = vadd.f32 %v3089_v24, %v1401_v14  ;;  %v1501_v19 = vadd.f32 %v3089_v24, %v1433_v15 }
 0x158   : > { %v965_v23 = vpop.f32.mrf.mxu0  ;;  %v1093_v25 = vpop.f32.mrf.mxu1 }
 0x159   : > { %v1533_v26 = vmax.f32 %v1469_v18, 0.0  ;;  %v1565_v27 = vmax.f32 %v1501_v19, 0.0  ;;  %v1402_v28 = vmul.f32 %v3087_v22, %v965_v23  ;;  %v1434_v29 = vmul.f32 %v3087_v22, %v1093_v25 }
 0x15a   : > { %v967_v30 = vpop.f32.mrf.mxu0  ;;  %v1095_v31 = vpop.f32.mrf.mxu1 }
 0x15b   : > { %v2288_v32 = vpack.c.bf16 %v1533_v26, %v1532_v20  ;;  %v2368_v33 = vpack.c.bf16 %v1565_v27, %v1564_v21  ;;  %v1470_v34 = vadd.f32 %v3089_v24, %v1402_v28  ;;  %v1502_v35 = vadd.f32 %v3089_v24, %v1434_v29 }
 0x15c   : > { %v968_v36 = vpop.f32.mrf.mxu0  ;;  %v1096_v37 = vpop.f32.mrf.mxu1 }
 0x15d   : > { %2436 = vst [vmem:[%s3104_s29 + $0x10] sm:$0xff] %v2288_v32   ;;  %2452 = vst [vmem:[%s3104_s29 + $0x90] sm:$0xff] %v2368_v33   ;;  %v1403_v38 = vmul.f32 %v3087_v22, %v968_v36  ;;  %v1435_v39 = vmul.f32 %v3087_v22, %v1096_v37  ;;  %v1534_v44 = vmax.f32 %v1470_v34, 0.0  ;;  %v1566_v45 = vmax.f32 %v1502_v35, 0.0 }
 0x15e   : > { %v970_v40 = vpop.f32.mrf.mxu0  ;;  %v1098_v41 = vpop.f32.mrf.mxu1 }
 0x15f   : > { %v1471_v42 = vadd.f32 %v3089_v24, %v1403_v38  ;;  %v1503_v43 = vadd.f32 %v3089_v24, %v1435_v39 }
 0x160   : > { %v973_v46 = vpop.f32.mrf.mxu0  ;;  %v1101_v47 = vpop.f32.mrf.mxu1 }
 0x161   : > { %v1535_v48 = vmax.f32 %v1471_v42, 0.0  ;;  %v1567_v49 = vmax.f32 %v1503_v43, 0.0  ;;  %v1404_v50 = vmul.f32 %v3087_v22, %v973_v46  ;;  %v1436_v51 = vmul.f32 %v3087_v22, %v1101_v47 }
 0x162   : > { %v975_v52 = vpop.f32.mrf.mxu0  ;;  %v1103_v53 = vpop.f32.mrf.mxu1 }
 0x163   : > { %v2293_v54 = vpack.c.bf16 %v1535_v48, %v1534_v44  ;;  %v2373_v55 = vpack.c.bf16 %v1567_v49, %v1566_v45  ;;  %v1472_v56 = vadd.f32 %v3089_v24, %v1404_v50  ;;  %v1504_v57 = vadd.f32 %v3089_v24, %v1436_v51 }
 0x164   : > { %v976_v58 = vpop.f32.mrf.mxu0  ;;  %v1104_v59 = vpop.f32.mrf.mxu1 }
 0x165   : > { %2437 = vst [vmem:[%s3104_s29 + $0x18] sm:$0xff] %v2293_v54   ;;  %2453 = vst [vmem:[%s3104_s29 + $0x98] sm:$0xff] %v2373_v55   ;;  %v1405_v60 = vmul.f32 %v3087_v22, %v976_v58  ;;  %v1437_v61 = vmul.f32 %v3087_v22, %v1104_v59  ;;  %v1536_v2 = vmax.f32 %v1472_v56, 0.0  ;;  %v1568_v3 = vmax.f32 %v1504_v57, 0.0 }
 0x166   : > { %v978_v62 = vpop.f32.mrf.mxu0  ;;  %v1106_v63 = vpop.f32.mrf.mxu1 }
 0x167   : > { %v1473_v0 = vadd.f32 %v3089_v24, %v1405_v60  ;;  %v1505_v1 = vadd.f32 %v3089_v24, %v1437_v61 }
 0x168   : > { %v981_v4 = vpop.f32.mrf.mxu0  ;;  %v1109_v5 = vpop.f32.mrf.mxu1 }
 0x169   : > { %v1537_v6 = vmax.f32 %v1473_v0, 0.0  ;;  %v1569_v7 = vmax.f32 %v1505_v1, 0.0  ;;  %v1406_v8 = vmul.f32 %v3087_v22, %v981_v4  ;;  %v1438_v9 = vmul.f32 %v3087_v22, %v1109_v5 }
 0x16a   : > { %v983_v10 = vpop.f32.mrf.mxu0  ;;  %v1111_v11 = vpop.f32.mrf.mxu1 }
 0x16b   : > { %v2298_v12 = vpack.c.bf16 %v1537_v6, %v1536_v2  ;;  %v2378_v13 = vpack.c.bf16 %v1569_v7, %v1568_v3  ;;  %v1474_v14 = vadd.f32 %v3089_v24, %v1406_v8  ;;  %v1506_v15 = vadd.f32 %v3089_v24, %v1438_v9 }
 0x16c   : > { %v984_v16 = vpop.f32.mrf.mxu0  ;;  %v1112_v17 = vpop.f32.mrf.mxu1 }
 0x16d   : > { %2438 = vst [vmem:[%s3104_s29 + $0x20] sm:$0xff] %v2298_v12   ;;  %2454 = vst [vmem:[%s3104_s29 + $0xa0] sm:$0xff] %v2378_v13   ;;  %v1407_v18 = vmul.f32 %v3087_v22, %v984_v16  ;;  %v1439_v19 = vmul.f32 %v3087_v22, %v1112_v17  ;;  %v1538_v26 = vmax.f32 %v1474_v14, 0.0  ;;  %v1570_v27 = vmax.f32 %v1506_v15, 0.0 }
 0x16e   : > { %v986_v20 = vpop.f32.mrf.mxu0  ;;  %v1114_v21 = vpop.f32.mrf.mxu1 }
 0x16f   : > { %v1475_v23 = vadd.f32 %v3089_v24, %v1407_v18  ;;  %v1507_v25 = vadd.f32 %v3089_v24, %v1439_v19 }
 0x170   : > { %v989_v28 = vpop.f32.mrf.mxu0  ;;  %v1117_v29 = vpop.f32.mrf.mxu1 }
 0x171   : > { %v1539_v30 = vmax.f32 %v1475_v23, 0.0  ;;  %v1571_v31 = vmax.f32 %v1507_v25, 0.0  ;;  %v1408_v32 = vmul.f32 %v3087_v22, %v989_v28  ;;  %v1440_v33 = vmul.f32 %v3087_v22, %v1117_v29 }
 0x172   : > { %v991_v34 = vpop.f32.mrf.mxu0  ;;  %v1119_v35 = vpop.f32.mrf.mxu1 }
 0x173   : > { %v2303_v36 = vpack.c.bf16 %v1539_v30, %v1538_v26  ;;  %v2383_v37 = vpack.c.bf16 %v1571_v31, %v1570_v27  ;;  %v1476_v38 = vadd.f32 %v3089_v24, %v1408_v32  ;;  %v1508_v39 = vadd.f32 %v3089_v24, %v1440_v33 }
 0x174   : > { %v992_v40 = vpop.f32.mrf.mxu0  ;;  %v1120_v41 = vpop.f32.mrf.mxu1 }
 0x175   : > { %2439 = vst [vmem:[%s3104_s29 + $0x28] sm:$0xff] %v2303_v36   ;;  %2455 = vst [vmem:[%s3104_s29 + $0xa8] sm:$0xff] %v2383_v37   ;;  %v1409_v42 = vmul.f32 %v3087_v22, %v992_v40  ;;  %v1441_v43 = vmul.f32 %v3087_v22, %v1120_v41  ;;  %v1540_v48 = vmax.f32 %v1476_v38, 0.0  ;;  %v1572_v49 = vmax.f32 %v1508_v39, 0.0 }
 0x176   : > { %v994_v44 = vpop.f32.mrf.mxu0  ;;  %v1122_v45 = vpop.f32.mrf.mxu1 }
 0x177   : > { %v1477_v46 = vadd.f32 %v3089_v24, %v1409_v42  ;;  %v1509_v47 = vadd.f32 %v3089_v24, %v1441_v43 }
 0x178   : > { %v997_v50 = vpop.f32.mrf.mxu0  ;;  %v1125_v51 = vpop.f32.mrf.mxu1 }
 0x179   : > { %v1541_v52 = vmax.f32 %v1477_v46, 0.0  ;;  %v1573_v53 = vmax.f32 %v1509_v47, 0.0  ;;  %v1410_v54 = vmul.f32 %v3087_v22, %v997_v50  ;;  %v1442_v55 = vmul.f32 %v3087_v22, %v1125_v51 }
 0x17a   : > { %v999_v56 = vpop.f32.mrf.mxu0  ;;  %v1127_v57 = vpop.f32.mrf.mxu1 }
 0x17b   : > { %v2308_v58 = vpack.c.bf16 %v1541_v52, %v1540_v48  ;;  %v2388_v59 = vpack.c.bf16 %v1573_v53, %v1572_v49  ;;  %v1478_v60 = vadd.f32 %v3089_v24, %v1410_v54  ;;  %v1510_v61 = vadd.f32 %v3089_v24, %v1442_v55 }
 0x17c   : > { %v1000_v62 = vpop.f32.mrf.mxu0  ;;  %v1128_v63 = vpop.f32.mrf.mxu1 }
 0x17d   : > { %2440 = vst [vmem:[%s3104_s29 + $0x30] sm:$0xff] %v2308_v58   ;;  %2456 = vst [vmem:[%s3104_s29 + $0xb0] sm:$0xff] %v2388_v59   ;;  %v1411_v0 = vmul.f32 %v3087_v22, %v1000_v62  ;;  %v1443_v1 = vmul.f32 %v3087_v22, %v1128_v63  ;;  %v1542_v6 = vmax.f32 %v1478_v60, 0.0  ;;  %v1574_v7 = vmax.f32 %v1510_v61, 0.0 }
 0x17e   : > { %v1002_v2 = vpop.f32.mrf.mxu0  ;;  %v1130_v3 = vpop.f32.mrf.mxu1 }
 0x17f   : > { %v1479_v4 = vadd.f32 %v3089_v24, %v1411_v0  ;;  %v1511_v5 = vadd.f32 %v3089_v24, %v1443_v1 }
 0x180   : > { %v1005_v8 = vpop.f32.mrf.mxu0  ;;  %v1133_v9 = vpop.f32.mrf.mxu1 }
 0x181   : > { %v1543_v10 = vmax.f32 %v1479_v4, 0.0  ;;  %v1575_v11 = vmax.f32 %v1511_v5, 0.0  ;;  %v1412_v12 = vmul.f32 %v3087_v22, %v1005_v8  ;;  %v1444_v13 = vmul.f32 %v3087_v22, %v1133_v9 }
 0x182   : > { %v1007_v14 = vpop.f32.mrf.mxu0  ;;  %v1135_v15 = vpop.f32.mrf.mxu1 }
 0x183   : > { %v2313_v16 = vpack.c.bf16 %v1543_v10, %v1542_v6  ;;  %v2393_v17 = vpack.c.bf16 %v1575_v11, %v1574_v7  ;;  %v1480_v18 = vadd.f32 %v3089_v24, %v1412_v12  ;;  %v1512_v19 = vadd.f32 %v3089_v24, %v1444_v13 }
 0x184   : > { %v1008_v20 = vpop.f32.mrf.mxu0  ;;  %v1136_v21 = vpop.f32.mrf.mxu1 }
 0x185   : > { %2441 = vst [vmem:[%s3104_s29 + $0x38] sm:$0xff] %v2313_v16   ;;  %2457 = vst [vmem:[%s3104_s29 + $0xb8] sm:$0xff] %v2393_v17   ;;  %v1413_v23 = vmul.f32 %v3087_v22, %v1008_v20  ;;  %v1445_v25 = vmul.f32 %v3087_v22, %v1136_v21  ;;  %v1544_v30 = vmax.f32 %v1480_v18, 0.0  ;;  %v1576_v31 = vmax.f32 %v1512_v19, 0.0 }
 0x186   : > { %v1010_v26 = vpop.f32.mrf.mxu0  ;;  %v1138_v27 = vpop.f32.mrf.mxu1 }
 0x187   : > { %v1481_v28 = vadd.f32 %v3089_v24, %v1413_v23  ;;  %v1513_v29 = vadd.f32 %v3089_v24, %v1445_v25 }
 0x188   : > { %v1013_v32 = vpop.f32.mrf.mxu0  ;;  %v1141_v33 = vpop.f32.mrf.mxu1 }
 0x189   : > { %v1545_v34 = vmax.f32 %v1481_v28, 0.0  ;;  %v1577_v35 = vmax.f32 %v1513_v29, 0.0  ;;  %v1414_v36 = vmul.f32 %v3087_v22, %v1013_v32  ;;  %v1446_v37 = vmul.f32 %v3087_v22, %v1141_v33 }
 0x18a   : > { %v1015_v38 = vpop.f32.mrf.mxu0  ;;  %v1143_v39 = vpop.f32.mrf.mxu1 }
 0x18b   : > { %v2318_v40 = vpack.c.bf16 %v1545_v34, %v1544_v30  ;;  %v2398_v41 = vpack.c.bf16 %v1577_v35, %v1576_v31  ;;  %v1482_v42 = vadd.f32 %v3089_v24, %v1414_v36  ;;  %v1514_v43 = vadd.f32 %v3089_v24, %v1446_v37 }
 0x18c   : > { %v1016_v44 = vpop.f32.mrf.mxu0  ;;  %v1144_v45 = vpop.f32.mrf.mxu1 }
 0x18d   : > { %2442 = vst [vmem:[%s3104_s29 + $0x40] sm:$0xff] %v2318_v40   ;;  %2458 = vst [vmem:[%s3104_s29 + $0xc0] sm:$0xff] %v2398_v41   ;;  %v1415_v46 = vmul.f32 %v3087_v22, %v1016_v44  ;;  %v1447_v47 = vmul.f32 %v3087_v22, %v1144_v45  ;;  %v1546_v52 = vmax.f32 %v1482_v42, 0.0  ;;  %v1578_v53 = vmax.f32 %v1514_v43, 0.0 }
 0x18e   : > { %v1018_v48 = vpop.f32.mrf.mxu0  ;;  %v1146_v49 = vpop.f32.mrf.mxu1 }
 0x18f   : > { %v1483_v50 = vadd.f32 %v3089_v24, %v1415_v46  ;;  %v1515_v51 = vadd.f32 %v3089_v24, %v1447_v47 }
 0x190   : > { %v1021_v54 = vpop.f32.mrf.mxu0  ;;  %v1149_v55 = vpop.f32.mrf.mxu1 }
 0x191   : > { %v1547_v56 = vmax.f32 %v1483_v50, 0.0  ;;  %v1579_v57 = vmax.f32 %v1515_v51, 0.0  ;;  %v1416_v58 = vmul.f32 %v3087_v22, %v1021_v54  ;;  %v1448_v59 = vmul.f32 %v3087_v22, %v1149_v55 }
 0x192   : > { %v1023_v60 = vpop.f32.mrf.mxu0  ;;  %v1151_v61 = vpop.f32.mrf.mxu1 }
 0x193   : > { %v2323_v62 = vpack.c.bf16 %v1547_v56, %v1546_v52  ;;  %v2403_v63 = vpack.c.bf16 %v1579_v57, %v1578_v53  ;;  %v1484_v0 = vadd.f32 %v3089_v24, %v1416_v58  ;;  %v1516_v1 = vadd.f32 %v3089_v24, %v1448_v59 }
 0x194   : > { %v1024_v2 = vpop.f32.mrf.mxu0  ;;  %v1152_v3 = vpop.f32.mrf.mxu1 }
 0x195   : > { %2443 = vst [vmem:[%s3104_s29 + $0x48] sm:$0xff] %v2323_v62   ;;  %2459 = vst [vmem:[%s3104_s29 + $0xc8] sm:$0xff] %v2403_v63   ;;  %v1417_v4 = vmul.f32 %v3087_v22, %v1024_v2  ;;  %v1449_v5 = vmul.f32 %v3087_v22, %v1152_v3  ;;  %v1548_v10 = vmax.f32 %v1484_v0, 0.0  ;;  %v1580_v11 = vmax.f32 %v1516_v1, 0.0 }
 0x196   : > { %v1026_v6 = vpop.f32.mrf.mxu0  ;;  %v1154_v7 = vpop.f32.mrf.mxu1 }
 0x197   : > { %v1485_v8 = vadd.f32 %v3089_v24, %v1417_v4  ;;  %v1517_v9 = vadd.f32 %v3089_v24, %v1449_v5 }
 0x198   : > { %v1029_v12 = vpop.f32.mrf.mxu0  ;;  %v1157_v13 = vpop.f32.mrf.mxu1 }
 0x199   : > { %v1549_v14 = vmax.f32 %v1485_v8, 0.0  ;;  %v1581_v15 = vmax.f32 %v1517_v9, 0.0  ;;  %v1418_v16 = vmul.f32 %v3087_v22, %v1029_v12  ;;  %v1450_v17 = vmul.f32 %v3087_v22, %v1157_v13 }
 0x19a   : > { %v1031_v18 = vpop.f32.mrf.mxu0  ;;  %v1159_v19 = vpop.f32.mrf.mxu1 }
 0x19b   : > { %v2328_v20 = vpack.c.bf16 %v1549_v14, %v1548_v10  ;;  %v2408_v21 = vpack.c.bf16 %v1581_v15, %v1580_v11  ;;  %v1486_v23 = vadd.f32 %v3089_v24, %v1418_v16  ;;  %v1518_v25 = vadd.f32 %v3089_v24, %v1450_v17 }
 0x19c   : > { %v1032_v26 = vpop.f32.mrf.mxu0  ;;  %v1160_v27 = vpop.f32.mrf.mxu1 }
 0x19d   : > { %2444 = vst [vmem:[%s3104_s29 + $0x50] sm:$0xff] %v2328_v20   ;;  %2460 = vst [vmem:[%s3104_s29 + $0xd0] sm:$0xff] %v2408_v21   ;;  %v1419_v28 = vmul.f32 %v3087_v22, %v1032_v26  ;;  %v1451_v29 = vmul.f32 %v3087_v22, %v1160_v27  ;;  %v1550_v34 = vmax.f32 %v1486_v23, 0.0  ;;  %v1582_v35 = vmax.f32 %v1518_v25, 0.0 }
 0x19e   : > { %v1034_v30 = vpop.f32.mrf.mxu0  ;;  %v1162_v31 = vpop.f32.mrf.mxu1 }
 0x19f   : > { %v1487_v32 = vadd.f32 %v3089_v24, %v1419_v28  ;;  %v1519_v33 = vadd.f32 %v3089_v24, %v1451_v29 }
 0x1a0   : > { %v1037_v36 = vpop.f32.mrf.mxu0  ;;  %v1165_v37 = vpop.f32.mrf.mxu1 }
 0x1a1   : > { %v1551_v38 = vmax.f32 %v1487_v32, 0.0  ;;  %v1583_v39 = vmax.f32 %v1519_v33, 0.0  ;;  %v1420_v40 = vmul.f32 %v3087_v22, %v1037_v36  ;;  %v1452_v41 = vmul.f32 %v3087_v22, %v1165_v37 }
 0x1a2   : > { %v1039_v42 = vpop.f32.mrf.mxu0  ;;  %v1167_v43 = vpop.f32.mrf.mxu1 }
 0x1a3   : > { %v2333_v44 = vpack.c.bf16 %v1551_v38, %v1550_v34  ;;  %v2413_v45 = vpack.c.bf16 %v1583_v39, %v1582_v35  ;;  %v1488_v46 = vadd.f32 %v3089_v24, %v1420_v40  ;;  %v1520_v47 = vadd.f32 %v3089_v24, %v1452_v41 }
 0x1a4   : > { %v1040_v48 = vpop.f32.mrf.mxu0  ;;  %v1168_v49 = vpop.f32.mrf.mxu1 }
 0x1a5   : > { %2445 = vst [vmem:[%s3104_s29 + $0x58] sm:$0xff] %v2333_v44   ;;  %2461 = vst [vmem:[%s3104_s29 + $0xd8] sm:$0xff] %v2413_v45   ;;  %v1421_v50 = vmul.f32 %v3087_v22, %v1040_v48  ;;  %v1453_v51 = vmul.f32 %v3087_v22, %v1168_v49  ;;  %v1552_v56 = vmax.f32 %v1488_v46, 0.0  ;;  %v1584_v57 = vmax.f32 %v1520_v47, 0.0 }
 0x1a6   : > { %v1042_v52 = vpop.f32.mrf.mxu0  ;;  %v1170_v53 = vpop.f32.mrf.mxu1 }
 0x1a7   : > { %v1489_v54 = vadd.f32 %v3089_v24, %v1421_v50  ;;  %v1521_v55 = vadd.f32 %v3089_v24, %v1453_v51 }
 0x1a8   : > { %v1045_v58 = vpop.f32.mrf.mxu0  ;;  %v1173_v59 = vpop.f32.mrf.mxu1 }
 0x1a9   : > { %v1553_v60 = vmax.f32 %v1489_v54, 0.0  ;;  %v1585_v61 = vmax.f32 %v1521_v55, 0.0  ;;  %v1422_v62 = vmul.f32 %v3087_v22, %v1045_v58  ;;  %v1454_v63 = vmul.f32 %v3087_v22, %v1173_v59 }
 0x1aa   : > { %v1047_v0 = vpop.f32.mrf.mxu0  ;;  %v1175_v1 = vpop.f32.mrf.mxu1 }
 0x1ab   : > { %v2338_v2 = vpack.c.bf16 %v1553_v60, %v1552_v56  ;;  %v2418_v3 = vpack.c.bf16 %v1585_v61, %v1584_v57  ;;  %v1490_v4 = vadd.f32 %v3089_v24, %v1422_v62  ;;  %v1522_v5 = vadd.f32 %v3089_v24, %v1454_v63 }
 0x1ac   : > { %v1048_v6 = vpop.f32.mrf.mxu0  ;;  %v1176_v7 = vpop.f32.mrf.mxu1 }
 0x1ad   : > { %2446 = vst [vmem:[%s3104_s29 + $0x60] sm:$0xff] %v2338_v2   ;;  %2462 = vst [vmem:[%s3104_s29 + $0xe0] sm:$0xff] %v2418_v3   ;;  %v1423_v8 = vmul.f32 %v3087_v22, %v1048_v6  ;;  %v1455_v9 = vmul.f32 %v3087_v22, %v1176_v7  ;;  %v1554_v14 = vmax.f32 %v1490_v4, 0.0  ;;  %v1586_v15 = vmax.f32 %v1522_v5, 0.0 }
 0x1ae   : > { %v1050_v10 = vpop.f32.mrf.mxu0  ;;  %v1178_v11 = vpop.f32.mrf.mxu1 }
 0x1af   : > { %v1491_v12 = vadd.f32 %v3089_v24, %v1423_v8  ;;  %v1523_v13 = vadd.f32 %v3089_v24, %v1455_v9 }
 0x1b0   : > { %v1053_v16 = vpop.f32.mrf.mxu0  ;;  %v1181_v17 = vpop.f32.mrf.mxu1 }
 0x1b1   : > { %v1555_v18 = vmax.f32 %v1491_v12, 0.0  ;;  %v1587_v19 = vmax.f32 %v1523_v13, 0.0  ;;  %v1424_v20 = vmul.f32 %v3087_v22, %v1053_v16  ;;  %v1456_v21 = vmul.f32 %v3087_v22, %v1181_v17 }
 0x1b2   : > { %v1055_v23 = vpop.f32.mrf.mxu0  ;;  %v1183_v25 = vpop.f32.mrf.mxu1 }
 0x1b3   : > { %v2343_v26 = vpack.c.bf16 %v1555_v18, %v1554_v14  ;;  %v2423_v27 = vpack.c.bf16 %v1587_v19, %v1586_v15  ;;  %v1492_v28 = vadd.f32 %v3089_v24, %v1424_v20  ;;  %v1524_v29 = vadd.f32 %v3089_v24, %v1456_v21 }
 0x1b4   : > { %v1056_v30 = vpop.f32.mrf.mxu0  ;;  %v1184_v31 = vpop.f32.mrf.mxu1 }
 0x1b5   : > { %2447 = vst [vmem:[%s3104_s29 + $0x68] sm:$0xff] %v2343_v26   ;;  %2463 = vst [vmem:[%s3104_s29 + $0xe8] sm:$0xff] %v2423_v27   ;;  %v1425_v32 = vmul.f32 %v3087_v22, %v1056_v30  ;;  %v1457_v33 = vmul.f32 %v3087_v22, %v1184_v31  ;;  %v1556_v38 = vmax.f32 %v1492_v28, 0.0  ;;  %v1588_v39 = vmax.f32 %v1524_v29, 0.0 }
 0x1b6   : > { %v1058_v34 = vpop.f32.mrf.mxu0  ;;  %v1186_v35 = vpop.f32.mrf.mxu1 }
 0x1b7   : > { %v1493_v36 = vadd.f32 %v3089_v24, %v1425_v32  ;;  %v1525_v37 = vadd.f32 %v3089_v24, %v1457_v33 }
 0x1b8   : > { %v1061_v40 = vpop.f32.mrf.mxu0  ;;  %v1189_v41 = vpop.f32.mrf.mxu1 }
 0x1b9   : > { %v1557_v42 = vmax.f32 %v1493_v36, 0.0  ;;  %v1589_v43 = vmax.f32 %v1525_v37, 0.0  ;;  %v1426_v44 = vmul.f32 %v3087_v22, %v1061_v40  ;;  %v1458_v45 = vmul.f32 %v3087_v22, %v1189_v41 }
 0x1ba   : > { %v1063_v46 = vpop.f32.mrf.mxu0  ;;  %v1191_v47 = vpop.f32.mrf.mxu1 }
 0x1bb   : > { %v2348_v48 = vpack.c.bf16 %v1557_v42, %v1556_v38  ;;  %v2428_v49 = vpack.c.bf16 %v1589_v43, %v1588_v39  ;;  %v1494_v52 = vadd.f32 %v3089_v24, %v1426_v44  ;;  %v1526_v53 = vadd.f32 %v3089_v24, %v1458_v45 }
 0x1bc   : > { %v1064_v50 = vpop.f32.mrf.mxu0  ;;  %v1192_v51 = vpop.f32.mrf.mxu1 }
 0x1bd   : > { %2448 = vst [vmem:[%s3104_s29 + $0x70] sm:$0xff] %v2348_v48   ;;  %2464 = vst [vmem:[%s3104_s29 + $0xf0] sm:$0xff] %v2428_v49   ;;  %v1427_v54 = vmul.f32 %v3087_v22, %v1064_v50  ;;  %v1459_v55 = vmul.f32 %v3087_v22, %v1192_v51  ;;  %v1558_v60 = vmax.f32 %v1494_v52, 0.0  ;;  %v1590_v61 = vmax.f32 %v1526_v53, 0.0 }
 0x1be   : > { %v1066_v56 = vpop.f32.mrf.mxu0  ;;  %v1194_v57 = vpop.f32.mrf.mxu1 }
 0x1bf   : > { %v1495_v58 = vadd.f32 %v3089_v24, %v1427_v54  ;;  %v1527_v59 = vadd.f32 %v3089_v24, %v1459_v55 }
 0x1c1   : > { %v1559_v62 = vmax.f32 %v1495_v58, 0.0  ;;  %v1591_v63 = vmax.f32 %v1527_v59, 0.0 }
 0x1c3   : > { %v2353_v22 = vpack.c.bf16 %v1559_v62, %v1558_v60  ;;  %v2433_v0 = vpack.c.bf16 %v1591_v63, %v1590_v61 }
 0x1c5   : > { %2449 = vst [vmem:[%s3104_s29 + $0x78] sm:$0xff] %v2353_v22   ;;  %2465 = vst [vmem:[%s3104_s29 + $0xf8] sm:$0xff] %v2433_v0  }
 0x1c6   : > { %2757 = shalt.err (!%p2754_p3)
}
 0x1c7   : > { %s2758_s26 = scalar_lea.hbm %s3257_s7, 4096  ;;  %s2762_s20 = scalar_lea.hbm %s3311_s3, 16384 }
 0x1c8   : > { %p2759_p5 = scmp.ne.s32.totalorder %s3257_s7, %s2758_s26  ;;  %p2763_p6 = scmp.lt.s32.totalorder %s3257_s7, %s3311_s3 }
 0x1c9   : > { %p2764_p11 = scmp.lt.s32.totalorder %s2762_s20, %s2758_s26 }
 0x1ca   : > { %p2760_p7 = pnand %p2759_p5, %p3322_p4 }
 0x1cb   : > { %p2765_p10 = por %p2764_p11, %p2763_p6 }
 0x1cc   : > { %p2761_p9 = pneg %p2760_p7 }
 0x1ce   : > { %p2766_p1 = pnand %p2765_p10, %p2761_p9 }
 0x1d0   : > { %2769 = shalt.err (!%p2766_p1)
}
 0x1d1   : > { %s2838_s29 = smov 64   ;;  %s2839_s4 = smov 4  }
 0x1d2   : > { %2504 = dma.vmem_to_hbm [thread:$0]  (%p3322_p4), %s3259_s21, 4096, %s3257_s7, %s1913_s15, %s2838_s29, %s2838_s29, %s2839_s4  }
 0x1d3 PF: > { %p2521_p8 = scmp.ge.s32.totalorder %s2828_s17, 2  ;;  %s1942_s5 = sand.u32 1, %s2808_s12  }
 0x1d4   : > { %p3323_p12 = scmp.ne.s32.totalorder %s3316_s23, 0  ;;  %s1943_s6 = scalar_lea.sflag [#allocation5], %s1942_s5 }
 0x1d6   : > { %p2515_p13 = pnand %p2521_p8, %p3323_p12 }
 0x1d8   : > { %p2516_p0 = pneg %p2515_p13 }
 0x1da   : > { %2803 = dma.done.wait (%p2516_p0), %s1943_s6, 4096  }
 0x1db   : > { %2805 = vsyncadd (%p2516_p0), %s1943_s6, 4294963200  ;;  %s20_s17 = sadd.s32 1, %s2828_s17   ;;  %s3324_s12 = smov %s2812_s13 }
 0x1dc   : > { %p17_p2 = scmp.ge.s32.totalorder %s20_s17, 6   ;;  %s3325_s13 = smov %s2816_s14 }
 0x1dd   : > { %s3326_s14 = smov %s2955_s19  ;;  %s3327_s15 = smov %s2824_s16 }
 0x1de   : > { %s3328_s16 = smov %s3330_s28  ;;  %19 = sbr.rel (!%p17_p2) target bundleno = 7 (0x7), region = 93 }
 0x1e3   :  { %1948 = vsyncpa [#allocation4], 1 }
 0x1e4   :  { %1950 = vsyncpa [#allocation4 + $0x1], 1 }
 0x1e5   :  { %1951 = vsyncpa [#allocation7], 1 }
 0x1e6   :  { %1952 = vsyncpa [#allocation5], 1 }
 0x1e7   :  { %1954 = vsyncpa [#allocation5 + $0x1], 1 }

</bundles_post_ra>
